<compile_context>
chip_gen: v5e
topology: v5e:2x2
jax: 0.10.0
libtpu: 0.0.40
codegen_flags: <defaults>
</compile_context>

<pallas_src>
import jax
import jax.numpy as jnp
from jax import lax
from jax.experimental import pallas as pl
from jax.experimental.pallas import tpu as pltpu


_NEG_BIG = -1.0e30  # finite "minus infinity" for the additive batch mask: exp(_NEG_BIG - m) == 0
                    # exactly, without ever producing inf/NaN (review correctness concern).


def word_attention_kernel(x_ref, w_ref, b_ref, mask_ref, v_ref, o_ref, m_ref, l_ref):
    # x_ref   : VMEM (R, D)   R = s_tile * B rows of the flattened (S*B, D) input (streamed)
    # w_ref   : VMEM (D, Ap)  Linear weight, transposed + zero-padded to Ap lanes (resident)
    # b_ref   : VMEM (1, Ap)  bias, zero-padded (resident, f32)
    # mask_ref: VMEM (R, B)   additive log-mask: 0 where row % B == batch column, -1e30 otherwise
    # v_ref   : SMEM (1,)     the learnable scalar v
    # o_ref   : VMEM (B, D)   resident f32 output block, doubles as the weighted-sum accumulator
    # m_ref   : VMEM (1, B)   running max of scores per batch column
    # l_ref   : VMEM (1, B)   running sum of exp(score - m)
    k = pl.program_id(0)

    @pl.when(k == 0)
    def _():
        m_ref[...] = jnp.full_like(m_ref, -jnp.inf)
        l_ref[...] = jnp.zeros_like(l_ref)
        o_ref[...] = jnp.zeros_like(o_ref)

    x = x_ref[...]                                                    # (R, D), stream dtype

    # mu = tanh(x @ W^T + b); zero-padded att columns give tanh(0) = 0 and drop out of the sum.
    mu = jnp.tanh(
        jnp.dot(x, w_ref[...], preferred_element_type=jnp.float32) + b_ref[...]
    )                                                                 # (R, Ap) f32
    # v is a scalar: score = v * sum_a mu[:, a]. (If a bundle dump showed the XLU slot hot, this
    # cross-lane sum could instead be folded into an MXU dot against an (Ap, 1) ones column.)
    score = v_ref[0] * jnp.sum(mu, axis=-1, keepdims=True)            # (R, 1) f32

    # Scatter scores to their batch column with the precomputed additive mask (softmax groups).
    masked = score + mask_ref[...]                                    # (R, B)

    # Online softmax over the sequence axis.
    tile_max = jnp.max(masked, axis=0, keepdims=True)                 # (1, B), always finite
    m_new = jnp.maximum(m_ref[...], tile_max)                         # (1, B)
    alpha = jnp.exp(m_ref[...] - m_new)                               # (1, B)
    p = jnp.exp(masked - m_new)                                       # (R, B); exactly 0 off-column

    l_ref[...] = alpha * l_ref[...] + jnp.sum(p, axis=0, keepdims=True)
    # o[b, :] = alpha[b] * o[b, :] + sum_r p[r, b] * x[r, :]  ==  p^T @ x on the MXU.
    o_ref[...] = o_ref[...] * jnp.transpose(alpha) + lax.dot_general(
        p.astype(x.dtype), x, (((0,), (0,)), ((), ())),
        preferred_element_type=jnp.float32,
    )
    m_ref[...] = m_new

    @pl.when(k == pl.num_programs(0) - 1)
    def _():
        inv_l = pl.reciprocal(l_ref[...], approx=False)               # exact; runs once on (1, B)
        o_ref[...] = o_ref[...] * jnp.transpose(inv_l)


def _vmem_budgets():
    """(scoped-VMEM limit, byte budget for the double-buffered x tile), generation-aware."""
    fallback = 64 * 1024 * 1024                      # v7x per-TensorCore VMEM (smallest of v5e/v6e/v7x)
    try:
        cap = getattr(pltpu.get_tpu_info(), "vmem_capacity_bytes", None) or fallback
    except Exception:                                # no TPU info available -> be conservative
        cap = fallback
    vmem_limit = int(min(cap * 3 // 4, 96 * 1024 * 1024))    # ~48 MiB on v7x, ~96 MiB on v5e/v6e
    tile_budget = int(min(vmem_limit // 3, 16 * 1024 * 1024))  # cap 2x-buffered x tile at 12-16 MiB
    return vmem_limit, tile_budget


def _auto_s_tile(seq_len, batch, in_dim, itemsize, tile_budget):
    """Largest divisor of seq_len whose (s_tile*batch, in_dim) x tile is sublane-aligned and whose
    *double-buffered* bytes fit the VMEM tile budget (capped at 2048 rows; per-grid-step overhead
    makes tiles below ~512 rows fall off the HBM roofline)."""
    total_rows = seq_len * batch
    rows_cap = min(2048, max(8, tile_budget // (2 * in_dim * itemsize)))
    divisors = [s for s in range(1, seq_len + 1) if seq_len % s == 0]
    for st in reversed(divisors):                     # largest tile that fits the budget + aligns
        rows = st * batch
        if rows <= rows_cap and (rows % 8 == 0 or rows == total_rows):
            return st
    for st in divisors:                               # fallback: smallest aligned tile (VMEM-safe)
        rows = st * batch
        if rows % 8 == 0 or rows == total_rows:
            return st
    return seq_len


def word_attention(x, w, b, v, *, s_tile=None, stream_dtype=jnp.bfloat16):
    """x: (S, B, D); w: (A, D) torch-Linear weight; b: (A,); v: scalar. Returns (B, D) in x.dtype.

    stream_dtype is the precision x (and W) are streamed / multiplied in; softmax state and both
    matmul accumulations are always f32. bf16 is the default since the kernel is HBM-bound on x."""
    S, B, D = x.shape
    A = w.shape[0]
    assert w.shape == (A, D) and b.shape == (A,)

    stream_dtype = jnp.dtype(stream_dtype)
    vmem_limit, tile_budget = _vmem_budgets()

    if s_tile is None:
        s_tile = _auto_s_tile(S, B, D, stream_dtype.itemsize, tile_budget)
    assert S % s_tile == 0, (S, s_tile)
    rows = s_tile * B
    assert rows % 8 == 0 or rows == S * B, rows

    # Lane-dense resident parameters: pad the attention dim to the minimal 128-lane multiple.
    Ap = ((A + 127) // 128) * 128
    w_pad = (jnp.zeros((D, Ap), jnp.float32).at[:, :A]
             .set(w.T.astype(jnp.float32)).astype(stream_dtype))
    b_pad = jnp.zeros((1, Ap), jnp.float32).at[:, :A].set(b.astype(jnp.float32).reshape(1, A))
    v_sc = jnp.asarray(v, jnp.float32).reshape(1)                 # SMEM scalar

    # Additive per-batch log-mask, built once: flattened row r belongs to batch column r % B, and
    # rows is a multiple of B, so the same (rows, B) mask is valid for every sequence tile.
    row_b = jnp.arange(rows, dtype=jnp.int32)[:, None] % B
    col_b = jnp.arange(B, dtype=jnp.int32)[None, :]
    neg_mask = jnp.where(row_b == col_b, 0.0, _NEG_BIG).astype(jnp.float32)

    # Free metadata reshape (no in-kernel relayout); stream in stream_dtype.
    x2 = x.reshape(S * B, D).astype(stream_dtype)

    out = pl.pallas_call(
        word_attention_kernel,
        out_shape=jax.ShapeDtypeStruct((B, D), jnp.float32),
        grid=(S // s_tile,),
        in_specs=[
            pl.BlockSpec((rows, D), lambda k: (k, 0)),            # x tiles, streamed over S
            pl.BlockSpec((D, Ap), lambda k: (0, 0)),              # W^T (padded), resident
            pl.BlockSpec((1, Ap), lambda k: (0, 0)),              # bias (padded), resident
            pl.BlockSpec((rows, B), lambda k: (0, 0)),            # additive batch mask, resident
            pl.BlockSpec(memory_space=pltpu.MemorySpace.SMEM),    # scalar v
        ],
        # NOTE: for D < 128 (demo shape) this (B, D) store is lane-sparse; production shapes
        # should keep D >= 128 (or present a (1, B*D) lane-dense slab) — written once, minor here.
        out_specs=pl.BlockSpec((B, D), lambda k: (0, 0)),         # resident accumulator output
        scratch_shapes=[
            pltpu.VMEM((1, B), jnp.float32),                      # running max m
            pltpu.VMEM((1, B), jnp.float32),                      # running denom l
        ],
        compiler_params=pltpu.CompilerParams(
            # TODO(synk): add a "parallel" batch grid axis (3-D blocks + per-core (m, l, acc)
            # partial combine) to use v7x's second TensorCore when B is large.
            dimension_semantics=("arbitrary",),                   # S is the softmax reduction axis
            vmem_limit_bytes=vmem_limit,
        ),
    )(x2, w_pad, b_pad, neg_mask, v_sc)
    return out.astype(x.dtype)


def ref_forward(x, w, b, v, stream_dtype=jnp.float32):
    """Pure-JAX reference. stream_dtype mimics the precision x/W are streamed at in the kernel."""
    xs = x.astype(stream_dtype).astype(jnp.float32)
    ws = w.astype(stream_dtype).astype(jnp.float32)
    mu = jnp.tanh(jnp.einsum("sbd,ad->sba", xs, ws) + b)      # (S, B, A)
    v_mu = jnp.sum(mu * v, axis=2)                            # (S, B)
    att = jax.nn.softmax(v_mu, axis=0)                        # softmax over the sequence axis
    return jnp.sum(att[:, :, None] * xs, axis=0)              # (B, D)


if __name__ == "__main__":
    S, B, D, A = 8, 2, 32, 16                                 # seq_len, batch, in_dim, att_dim

    key = jax.random.PRNGKey(0)
    kx, kw, kb = jax.random.split(key, 3)

    x = jax.random.normal(kx, (S, B, D), dtype=jnp.float32)

    # Deterministic parameter init (shapes per nn.Linear(in_dim, att_dim)).
    bound = 1.0 / (D ** 0.5)
    w = jax.random.uniform(kw, (A, D), jnp.float32, -bound, bound)   # PyTorch weight (A, D)
    b = jax.random.uniform(kb, (A,), jnp.float32, -bound, bound)     # PyTorch bias (A,)
    v = jnp.float32(A)                                               # self.v = tensor(att_dim)

    # 1) f32 streaming, forced multi-step grid (s_tile=4 -> 2 sequence steps): exercises the
    #    online-softmax rescaling path against the exact reference.
    ref32 = ref_forward(x, w, b, v)
    out32 = jax.block_until_ready(
        word_attention(x, w, b, v, s_tile=4, stream_dtype=jnp.float32))
    assert out32.shape == (B, D)
    assert jnp.allclose(out32, ref32, atol=2e-3, rtol=2e-3), \
        float(jnp.max(jnp.abs(out32 - ref32)))

    # 2) Default path: bf16 streaming (the HBM-bandwidth lever from the review) with the auto
    #    VMEM/D-aware tile; compared against a reference fed the same bf16-rounded x / W.
    ref16 = ref_forward(x, w, b, v, stream_dtype=jnp.bfloat16)
    out16 = jax.block_until_ready(word_attention(x, w, b, v))
    assert out16.shape == (B, D)
    assert jnp.allclose(out16, ref16, atol=1e-2, rtol=1e-2), \
        float(jnp.max(jnp.abs(out16 - ref16)))

    print("KERNEL_OK")
</pallas_src>

<mosaic_0001>
module attributes {stable_mosaic.version = 11 : i64} {
  func.func @word_attention_kernel(%arg0: i32, %arg1: memref<8x32xf32, #tpu.memory_space<vmem>>, %arg2: memref<32x128xf32, #tpu.memory_space<vmem>>, %arg3: memref<1x128xf32, #tpu.memory_space<vmem>>, %arg4: memref<8x2xf32, #tpu.memory_space<vmem>>, %arg5: memref<1xf32, #tpu.memory_space<smem>>, %arg6: memref<2x32xf32, #tpu.memory_space<vmem>>, %arg7: memref<1x2xf32, #tpu.memory_space<vmem>>, %arg8: memref<1x2xf32, #tpu.memory_space<vmem>>) attributes {dimension_semantics = [#tpu.dimension_semantics<arbitrary>], iteration_bounds = array<i64: 2>, scalar_prefetch = 0 : i64, scratch_operands = 2 : i64, tpu.core_type = #tpu.core_type<tc>, window_params = [{transform_indices = @transform_0, window_bounds = array<i64: 8, 32>}, {pipeline_mode = #tpu.pipeline_mode<synchronous>, transform_indices = @transform_1, window_bounds = array<i64: 32, 128>}, {pipeline_mode = #tpu.pipeline_mode<synchronous>, transform_indices = @transform_2, window_bounds = array<i64: 1, 128>}, {pipeline_mode = #tpu.pipeline_mode<synchronous>, transform_indices = @transform_3, window_bounds = array<i64: 8, 2>}, {transform_indices = @transform_4, window_bounds = array<i64: 1>}, {pipeline_mode = #tpu.pipeline_mode<synchronous>, transform_indices = @transform_5, window_bounds = array<i64: 2, 32>}]} {
    %c0_i32 = arith.constant 0 : i32
    %0 = arith.cmpi eq, %arg0, %c0_i32 : i32
    %1 = arith.extui %0 : i1 to i32
    %c0_i32_0 = arith.constant 0 : i32
    %2 = arith.cmpi ne, %1, %c0_i32_0 : i32
    scf.if %2 {
      %cst_28 = arith.constant 0xFF800000 : f32
      %45 = vector.broadcast %cst_28 : f32 to vector<1x2xf32>
      %c0_29 = arith.constant 0 : index
      %c0_30 = arith.constant 0 : index
      %46 = vector.load %arg7[%c0_29, %c0_30] : memref<1x2xf32, #tpu.memory_space<vmem>>, vector<1x2xf32>
      tpu.vector_store %arg7[%c0_29, %c0_30], %45 {strides = array<i32>} : memref<1x2xf32, #tpu.memory_space<vmem>>, vector<1x2xf32>,
      %cst_31 = arith.constant 0.000000e+00 : f32
      %47 = vector.broadcast %cst_31 : f32 to vector<1x2xf32>
      %c0_32 = arith.constant 0 : index
      %c0_33 = arith.constant 0 : index
      %48 = vector.load %arg8[%c0_32, %c0_33] : memref<1x2xf32, #tpu.memory_space<vmem>>, vector<1x2xf32>
      tpu.vector_store %arg8[%c0_32, %c0_33], %47 {strides = array<i32>} : memref<1x2xf32, #tpu.memory_space<vmem>>, vector<1x2xf32>,
      %cst_34 = arith.constant 0.000000e+00 : f32
      %49 = vector.broadcast %cst_34 : f32 to vector<2x32xf32>
      %c0_35 = arith.constant 0 : index
      %c0_36 = arith.constant 0 : index
      %50 = vector.load %arg6[%c0_35, %c0_36] : memref<2x32xf32, #tpu.memory_space<vmem>>, vector<2x32xf32>
      tpu.vector_store %arg6[%c0_35, %c0_36], %49 {strides = array<i32>} : memref<2x32xf32, #tpu.memory_space<vmem>>, vector<2x32xf32>,
    } else {
    }
    %c0 = arith.constant 0 : index
    %c0_1 = arith.constant 0 : index
    %3 = vector.load %arg1[%c0, %c0_1] : memref<8x32xf32, #tpu.memory_space<vmem>>, vector<8x32xf32>
    %c0_2 = arith.constant 0 : index
    %c0_3 = arith.constant 0 : index
    %4 = vector.load %arg2[%c0_2, %c0_3] : memref<32x128xf32, #tpu.memory_space<vmem>>, vector<32x128xf32>
    %cst = arith.constant dense<0.000000e+00> : vector<8x128xf32>
    %5 = tpu.matmul %3, %4, %cst {dimension_numbers = #tpu.dot_dimension_numbers<[1], [0], [0], [1], [0, 0, 1, 1], [], []>} : vector<8x32xf32>, vector<32x128xf32>, vector<8x128xf32> -> vector<8x128xf32>
    %c0_4 = arith.constant 0 : index
    %c0_5 = arith.constant 0 : index
    %6 = vector.load %arg3[%c0_4, %c0_5] : memref<1x128xf32, #tpu.memory_space<vmem>>, vector<1x128xf32>
    %7 = vector.broadcast %6 : vector<1x128xf32> to vector<8x128xf32>
    %8 = arith.addf %5, %7 : vector<8x128xf32>
    %9 = math.tanh %8 : vector<8x128xf32>
    %c0_6 = arith.constant 0 : index
    %10 = memref.load %arg5[%c0_6] : memref<1xf32, #tpu.memory_space<smem>>
    %cst_7 = arith.constant dense<0.000000e+00> : vector<8xf32>
    %11 = vector.multi_reduction <add>, %9, %cst_7 [1] : vector<8x128xf32> to vector<8xf32>
    %12 = vector.shape_cast %11 : vector<8xf32> to vector<8x1xf32>
    %13 = vector.broadcast %10 : f32 to vector<8x1xf32>
    %14 = arith.mulf %13, %12 : vector<8x1xf32>
    %c0_8 = arith.constant 0 : index
    %c0_9 = arith.constant 0 : index
    %15 = vector.load %arg4[%c0_8, %c0_9] : memref<8x2xf32, #tpu.memory_space<vmem>>, vector<8x2xf32>
    %16 = vector.broadcast %14 : vector<8x1xf32> to vector<8x2xf32>
    %17 = arith.addf %16, %15 : vector<8x2xf32>
    %cst_10 = arith.constant dense<0xFF800000> : vector<2xf32>
    %18 = vector.multi_reduction <maximumf>, %17, %cst_10 [0] : vector<8x2xf32> to vector<2xf32>
    %19 = vector.shape_cast %18 : vector<2xf32> to vector<1x2xf32>
    %c0_11 = arith.constant 0 : index
    %c0_12 = arith.constant 0 : index
    %20 = vector.load %arg7[%c0_11, %c0_12] : memref<1x2xf32, #tpu.memory_space<vmem>>, vector<1x2xf32>
    %21 = arith.maximumf %20, %19 : vector<1x2xf32>
    %c0_13 = arith.constant 0 : index
    %c0_14 = arith.constant 0 : index
    %22 = vector.load %arg7[%c0_13, %c0_14] : memref<1x2xf32, #tpu.memory_space<vmem>>, vector<1x2xf32>
    %23 = arith.subf %22, %21 : vector<1x2xf32>
    %24 = math.exp %23 : vector<1x2xf32>
    %25 = vector.broadcast %21 : vector<1x2xf32> to vector<8x2xf32>
    %26 = arith.subf %17, %25 : vector<8x2xf32>
    %27 = math.exp %26 : vector<8x2xf32>
    %c0_15 = arith.constant 0 : index
    %c0_16 = arith.constant 0 : index
    %28 = vector.load %arg8[%c0_15, %c0_16] : memref<1x2xf32, #tpu.memory_space<vmem>>, vector<1x2xf32>
    %29 = arith.mulf %24, %28 : vector<1x2xf32>
    %cst_17 = arith.constant dense<0.000000e+00> : vector<2xf32>
    %30 = vector.multi_reduction <add>, %27, %cst_17 [0] : vector<8x2xf32> to vector<2xf32>
    %31 = vector.shape_cast %30 : vector<2xf32> to vector<1x2xf32>
    %32 = arith.addf %29, %31 : vector<1x2xf32>
    %c0_18 = arith.constant 0 : index
    %c0_19 = arith.constant 0 : index
    %33 = vector.load %arg8[%c0_18, %c0_19] : memref<1x2xf32, #tpu.memory_space<vmem>>, vector<1x2xf32>
    tpu.vector_store %arg8[%c0_18, %c0_19], %32 {strides = array<i32>} : memref<1x2xf32, #tpu.memory_space<vmem>>, vector<1x2xf32>,
    %c0_20 = arith.constant 0 : index
    %c0_21 = arith.constant 0 : index
    %34 = vector.load %arg6[%c0_20, %c0_21] : memref<2x32xf32, #tpu.memory_space<vmem>>, vector<2x32xf32>
    %35 = tpu.transpose %24, [1, 0] : vector<1x2xf32> -> vector<2x1xf32>
    %36 = vector.broadcast %35 : vector<2x1xf32> to vector<2x32xf32>
    %37 = arith.mulf %34, %36 : vector<2x32xf32>
    %cst_22 = arith.constant dense<0.000000e+00> : vector<2x32xf32>
    %38 = tpu.matmul %27, %3, %cst_22 {dimension_numbers = #tpu.dot_dimension_numbers<[0], [0], [1], [1], [0, 1, 1, 1], [], []>} : vector<8x2xf32>, vector<8x32xf32>, vector<2x32xf32> -> vector<2x32xf32>
    %39 = arith.addf %37, %38 : vector<2x32xf32>
    %c0_23 = arith.constant 0 : index
    %c0_24 = arith.constant 0 : index
    %40 = vector.load %arg6[%c0_23, %c0_24] : memref<2x32xf32, #tpu.memory_space<vmem>>, vector<2x32xf32>
    tpu.vector_store %arg6[%c0_23, %c0_24], %39 {strides = array<i32>} : memref<2x32xf32, #tpu.memory_space<vmem>>, vector<2x32xf32>,
    %c0_25 = arith.constant 0 : index
    %c0_26 = arith.constant 0 : index
    %41 = vector.load %arg7[%c0_25, %c0_26] : memref<1x2xf32, #tpu.memory_space<vmem>>, vector<1x2xf32>
    tpu.vector_store %arg7[%c0_25, %c0_26], %21 {strides = array<i32>} : memref<1x2xf32, #tpu.memory_space<vmem>>, vector<1x2xf32>,
    %c1_i32 = arith.constant 1 : i32
    %42 = arith.cmpi eq, %arg0, %c1_i32 : i32
    %43 = arith.extui %42 : i1 to i32
    %c0_i32_27 = arith.constant 0 : i32
    %44 = arith.cmpi ne, %43, %c0_i32_27 : i32
    scf.if %44 {
      %c0_28 = arith.constant 0 : index
      %c0_29 = arith.constant 0 : index
      %45 = vector.load %arg8[%c0_28, %c0_29] : memref<1x2xf32, #tpu.memory_space<vmem>>, vector<1x2xf32>
      %46 = tpu.reciprocal %45 : vector<1x2xf32> -> vector<1x2xf32>
      %c0_30 = arith.constant 0 : index
      %c0_31 = arith.constant 0 : index
      %47 = vector.load %arg6[%c0_30, %c0_31] : memref<2x32xf32, #tpu.memory_space<vmem>>, vector<2x32xf32>
      %48 = tpu.transpose %46, [1, 0] : vector<1x2xf32> -> vector<2x1xf32>
      %49 = vector.broadcast %48 : vector<2x1xf32> to vector<2x32xf32>
      %50 = arith.mulf %47, %49 : vector<2x32xf32>
      %c0_32 = arith.constant 0 : index
      %c0_33 = arith.constant 0 : index
      %51 = vector.load %arg6[%c0_32, %c0_33] : memref<2x32xf32, #tpu.memory_space<vmem>>, vector<2x32xf32>
      tpu.vector_store %arg6[%c0_32, %c0_33], %50 {strides = array<i32>} : memref<2x32xf32, #tpu.memory_space<vmem>>, vector<2x32xf32>,
    } else {
    }
    return
  }
  func.func @transform_0(%arg0: i32) -> (i32, i32) {
    %c0_i32 = arith.constant 0 : i32
    %c0_i32_0 = arith.constant 0 : i32
    return %arg0, %c0_i32 : i32, i32
  }
  func.func @transform_1(%arg0: i32) -> (i32, i32) {
    %c0_i32 = arith.constant 0 : i32
    %c0_i32_0 = arith.constant 0 : i32
    %c0_i32_1 = arith.constant 0 : i32
    return %c0_i32, %c0_i32_0 : i32, i32
  }
  func.func @transform_2(%arg0: i32) -> (i32, i32) {
    %c0_i32 = arith.constant 0 : i32
    %c0_i32_0 = arith.constant 0 : i32
    %c0_i32_1 = arith.constant 0 : i32
    return %c0_i32, %c0_i32_0 : i32, i32
  }
  func.func @transform_3(%arg0: i32) -> (i32, i32) {
    %c0_i32 = arith.constant 0 : i32
    %c0_i32_0 = arith.constant 0 : i32
    %c0_i32_1 = arith.constant 0 : i32
    return %c0_i32, %c0_i32_0 : i32, i32
  }
  func.func @transform_4(%arg0: i32) -> i32 {
    %c0_i32 = arith.constant 0 : i32
    %c0_i32_0 = arith.constant 0 : i32
    return %c0_i32 : i32
  }
  func.func @transform_5(%arg0: i32) -> (i32, i32) {
    %c0_i32 = arith.constant 0 : i32
    %c0_i32_0 = arith.constant 0 : i32
    %c0_i32_1 = arith.constant 0 : i32
    return %c0_i32, %c0_i32_0 : i32, i32
  }
}

</mosaic_0001>

<bundles_post_ra>
// kernel: tpu_custom_call.1
= control target key start
LH: loop header
LB: loop body
LE: loop exit
PB: predicated region body
PF: predicated region fallthrough
CT: control target
= control target key end

     0   :  { %s941_s0 = inlined_call_operand.hbm [shape: f32[16,32], index: 0, kind: input, shape index: {}]   ;;  %s942_s1 = inlined_call_operand.hbm [shape: f32[32,128], index: 1, kind: input, shape index: {}]   ;;  %s943_s2 = inlined_call_operand.vmem [shape: f32[1,128], index: 2, kind: input, shape index: {}]   ;;  %s944_s3 = inlined_call_operand.vmem [shape: f32[8,2], index: 3, kind: input, shape index: {}]   ;;  %s945_s4 = inlined_call_operand.<no memory space> [shape: f32[1], index: 4, kind: input, shape index: {}]   ;;  %s946_s5 = inlined_call_operand.hbm [shape: f32[2,32], index: 5, kind: output, shape index: {}]  }
   0x1   :  { %10 = sst [smem:[#allocation4]] %s945_s4 }
   0x2   :  { %11 = vsyncpa [#allocation6], 0 }
   0x3   :  { %13 = vsyncpa [#allocation6 + $0x1], 0 }
   0x4   :  { %14 = vsyncpa [#allocation9], 0 }
   0x5   :  { %15 = vsyncpa [#allocation7], 0  ;;  %s823_s20 = smov 0   ;;  %s825_s21 = smov 0  }
   0x6   :  { %s827_s22 = smov 0   ;;  %s829_s23 = smov 0  }
   0x7 LB: > { %s168_s25 = sshll.u32 %s942_s1, 4  ;;  %s845_s26 = sadd.s32 4294967295, %s780_s23   ;;  %s780_s23 = sphi %s829_s23, %s953_s23   ;;  %s776_s22 = sphi %s827_s22, %s952_s22   ;;  %s772_s21 = sphi %s825_s21, %s951_s21   ;;  %s768_s20 = sphi %s823_s20, %s950_s20   ;;  %s169_s25 = int_to_ptr.hbm [resolvable:$true] %s168_s25 }
   0x8   : > { %p557_p0 = scmp.ge.s32.totalorder %s780_s23, 1  ;;  %p42_p1 = scmp.eq.s32.totalorder %s845_s26, 0 }
   0x9   : > { %p157_p2 = scmp.lt.s32.totalorder %s780_s23, 3  ;;  %p558_p3 = scmp.ne.s32.totalorder %s845_s26, 0 }
   0xa   : > { %s782_s28 = smov [#allocation8]   ;;  %s783_s30 = smov 128  }
   0xb   : > { %p851_p4 = pnand %p557_p0, %p157_p2  ;;  %s170_s29 = sshll.u32 %s782_s28, 4  ;;  %s171_s29 = int_to_ptr.vmem [resolvable:$true] %s170_s29 }
   0xc   : > { %s784_s6 = smov 8   ;;  %s860_s7 = sadd.s32 1, %s780_s23  }
   0xd   : > { %p583_p5 = pneg %p851_p4  ;;  %s25_s8 = ssub.s32 %s780_s23, %s860_s7 }
   0xe   : > { %s28_s9 = sadd.s32 1, %s776_s22  ;;  %p26_p7 = scmp.eq.s32.totalorder %s25_s8, 0 }
   0xf   : > { %p584_p6 = pnand %p583_p5, %p42_p1  ;;  %p35_p8 = scmp.ne.s32.totalorder %s776_s22, %s772_s21 }
  0x10   : > { %p36_p9 = scmp.eq.s32.totalorder %s780_s23, 0  ;;  %p41_p10 = scmp.ne.s32.totalorder %s772_s21, %s768_s20 }
  0x11   : > { %586 = dma.hbm_to_vmem [thread:$0]  (!%p584_p6), %s169_s25, 512, %s171_s29, [#allocation9], %s783_s30, %s783_s30, %s784_s6  }
  0x12   : > { %s870_s10 = scalar_select %p26_p7, %s776_s22, %s28_s9  }
  0x13   : > { %p37_p11 = por %p36_p9, %p35_p8  ;;  %p874_p12 = por %p42_p1, %p41_p10 }
  0x14   : > { %p592_p13 = scmp.lt.s32.totalorder %s780_s23, 2  ;;  %s193_s12 = sand.u32 1, %s776_s22  }
  0x15   : > { %s560_s13 = sshll.u32 %s193_s12, 3  ;;  %s561_s14 = sshll.u32 %s780_s23, 3 }
  0x16   : > { %s201_s17 = scalar_lea.hbm %s941_s0, %s561_s14  ;;  %s197_s18 = scalar_lea.vmem [#allocation5], %s560_s13 }
  0x17   : > { %s205_s19 = sshll.u32 %s197_s18, 4  ;;  %s203_s4 = sshll.u32 %s201_s17, 4  ;;  %s206_s19 = int_to_ptr.vmem [resolvable:$true] %s205_s19  ;;  %s204_s4 = int_to_ptr.hbm [resolvable:$true] %s203_s4 }
  0x18   : > { %p884_p0 = pnand %p592_p13, %p37_p11  ;;  %s194_s24 = scalar_lea.sflag [#allocation6], %s193_s12 }
  0x19   : > { %s680_s25 = sshra.s32 %s204_s4, 4  ;;  %s687_s30 = scalar_lea.hbm %s941_s0, 16  ;;  %s681_s25 = int_to_ptr.hbm [resolvable:$true] %s680_s25 }
  0x1a   : > { %s682_s28 = scalar_lea.hbm %s681_s25, 8  ;;  %p684_p5 = pneg %p884_p0 }
  0x1b   : > { %p683_p2 = scmp.ne.s32.totalorder %s681_s25, %s682_s28  ;;  %p688_p8 = scmp.lt.s32.totalorder %s681_s25, %s941_s0 }
  0x1c   : > { %p689_p9 = scmp.lt.s32.totalorder %s687_s30, %s682_s28 }
  0x1d   : > { %p685_p6 = pnand %p684_p5, %p683_p2 }
  0x1e   : > { %p690_p10 = por %p689_p9, %p688_p8 }
  0x1f   : > { %p686_p7 = pneg %p685_p6 }
  0x21   : > { %p691_p11 = pnand %p690_p10, %p686_p7 }
  0x23   : > { %694 = shalt.err (!%p691_p11)
}
  0x24   : > { %590 = dma.hbm_to_vmem [thread:$0]  (!%p884_p0), %s204_s4, 128, %s206_s19, %s194_s24  }
  0x25   : > { %214 = sbr.rel (%p851_p4) target bundleno = 945 (0x3b1), region = 40  ;;  %s216_s9 = sand.u32 (!%p851_p4), 1, %s772_s21  }
  0x26   : > { %s563_s12 = sshll.u32 (!%p851_p4), %s216_s9, 3  ;;  %s217_s13 = scalar_lea.sflag (!%p851_p4), [#allocation6], %s216_s9 }
  0x27   : > { %s220_s14 = scalar_lea.vmem (!%p851_p4), [#allocation5], %s563_s12 }
  0x2a   : > { %755 = dma.done.wait (%p874_p12), %s217_s13, 128  }
  0x2b   : > { %757 = vsyncadd (%p874_p12), %s217_s13, 4294967168 }
  0x2c   : > { %759 = dma.done.wait (%p42_p1), [#allocation9], 512  }
  0x2d   : > { %761 = vsyncadd (%p42_p1), [#allocation9], 4294966784  ;;  %251 = sbr.rel (%p558_p3) target bundleno = 54 (0x36), region = 52 }
  0x32   : > { %vm252_vm0 = vcmask 8192   ;;  %vm255_vm1 = vcmask 254976   ;;  %v785_v0 = vmov -inf   ;;  %v786_v1 = vmov 0.0  }
  0x33   : > { %253 = vst.msk [vmem:[#allocation2] sm:$0x1] %vm252_vm0, %v785_v0 }
  0x34   : > { %254 = vst.msk [vmem:[#allocation3] sm:$0x1] %vm252_vm0, %v786_v1 }
  0x35   : > { %256 = vst.msk [vmem:[#allocation10] sm:$0x3] %vm255_vm1, %v786_v1 }
  0x36 PF: > { %v261_v2 = vld [vmem:[#allocation8 + $0x18] sm:$0xff]  ;;  %v260_v3 = vld [vmem:[#allocation8 + $0x10] sm:$0xff]  ;;  %v259_v5 = vld [vmem:[#allocation8 + $0x8] sm:$0xff]  ;;  %vm266_vm2 = vcmask 261120   ;;  %s291_s15 = sld [smem:[#allocation4]]  ;;  %vm298_vm3 = vcmask 15360  }
  0x37   : > { %282 = vmatpush.msra.mxu0 %v261_v2  ;;  %v257_v4 = vld [vmem:[%s220_s14] sm:$0xff]  ;;  %v258_v6 = vld [vmem:[#allocation8] sm:$0xff]  ;;  %v640_v7 = vld [vmem:[%s943_s2] ss:$0 sm:$0xff]  ;;  %vm327_vm4 = vcmask 8192   ;;  %v787_v42 = vmov 0  }
  0x38   : > { %419 = vmatpush.msra.mxu1 %v257_v4  ;;  %v296_v12 = vld [vmem:[%s944_s3] sm:$0xff]  ;;  %vm400_vm5 = vcmask 64512   ;;  %vm425_vm6 = vcmask 254976   ;;  %p568_p1 = scmp.ne.s32.totalorder %s845_s26, 1 }
  0x39   : > { %283 = vmatpush.msra.mxu0 %v260_v3 }
  0x3a   : > { %v306_v22 = vld [vmem:[#allocation2] sm:$0x1] }
  0x3b   : > { %284 = vmatpush.msra.mxu0 %v259_v5  ;;  %v317_v37 = vld [vmem:[#allocation3] sm:$0x1] }
  0x3c   : > { %v294_v11 = vstv %s291_s15  ;;  %v329_v45 = vld [vmem:[#allocation10] sm:$0x3] }
  0x3d   : > { %285 = vmatpush.msra.mxu0 %v258_v6 }
  0x3e   : > { %566 = vmatmul.msk.f32.vlgmr.msra.gmra.mxu0 %vm266_vm2, %v257_v4 }
  0xbb   : > { %v287_v8 = vpop.f32.mrf.mxu0 }
  0xbc   : > { %v288_v9 = vadd.f32 %v640_v7, %v287_v8 }
  0xbe   : > { %641 = vtanh.f32 %v288_v9 }
  0xc4   : > { %v642_v10 = vpop.eup %641 }
  0xc5   : > { %292 = vadd.xlane.f32.xlu0 %v642_v10 }
 0x138   : > { %v293_v13 = vpop.xlane.xlu0 %292 }
 0x139   : > { %v295_v14 = vmul.f32 %v294_v11, %v293_v13 }
 0x13b   : > { %v297_v15 = vadd.f32 %v296_v12, %v295_v14 }
 0x13d   : > { %v299_v16 = vsel %vm298_vm3, %v297_v15, -inf }
 0x13e   : > { %v300_v17 = vrot.slane %v299_v16, 4 }
 0x140   : > { %v301_v18 = vmax.f32 %v299_v16, %v300_v17 }
 0x142   : > { %v302_v19 = vrot.slane %v301_v18, 2 }
 0x144   : > { %v303_v20 = vmax.f32 %v301_v18, %v302_v19 }
 0x146   : > { %v304_v21 = vrot.slane %v303_v20, 1 }
 0x148   : > { %v305_v23 = vmax.f32 %v303_v20, %v304_v21 }
 0x14a   : > { %v307_v24 = vmax.f32 %v306_v22, %v305_v23 }
 0x14c   : > { %v312_v25 = vperm.slane %v307_v24, 0  ;;  %427 = vst.msk [vmem:[#allocation2] sm:$0x1] %vm327_vm4, %v307_v24  ;;  %v308_v26 = vsub.f32 %v306_v22, %v307_v24 }
 0x14e   : > { %v314_v27 = vsub.f32 %v297_v15, %v312_v25  ;;  %v309_v28 = vmul.f32 1.442695, %v308_v26 }
 0x150   : > { %v315_v29 = vmul.f32 1.442695, %v314_v27  ;;  %643 = vpow2.f32 %v309_v28 }
 0x152   : > { %645 = vpow2.f32 %v315_v29 }
 0x156   : > { %v644_v30 = vpop.eup %643 }
 0x157   : > { %330 = vxpose.xlu1.b32.start.end [1/1] (short) (narrow) %v644_v30, 8  ;;  %v318_v40 = vmul.f32 %v644_v30, %v317_v37 }
 0x158   : > { %v646_v31 = vpop.eup %645 }
 0x159   : > { %v319_v32 = vsel %vm298_vm3, %v646_v31, 0.0  ;;  %368 = vxpose.xlu0.b32.start.end [1/1] (short) (narrow) %v646_v31, 8 }
 0x15a   : > { %v320_v33 = vrot.slane %v319_v32, 4 }
 0x15c   : > { %v321_v34 = vadd.f32 %v320_v33, %v319_v32 }
 0x15e   : > { %v322_v35 = vrot.slane %v321_v34, 2 }
 0x160   : > { %v323_v36 = vadd.f32 %v322_v35, %v321_v34 }
 0x162   : > { %v324_v38 = vrot.slane %v323_v36, 1 }
 0x164   : > { %v325_v39 = vadd.f32 %v324_v38, %v323_v36 }
 0x166   : > { %v326_v41 = vadd.f32 %v325_v39, %v318_v40 }
 0x168   : > { %328 = vst.msk [vmem:[#allocation3] sm:$0x1] %vm327_vm4, %v326_v41 }
 0x1aa   : > { %638 = vset.pattern.permute.xlu1 %v787_v42 }
 0x1c0   : > { %639 = vset.pattern.permute.xlu0 %v787_v42 }
 0x1fb   : > { %v346_v43 = vpop.trf.xlu1 }
 0x1fc   : > { %364 = vperm.xlu1 %638, %v346_v43  }
 0x1fd   : > { %v384_v44 = vpop.trf.xlu0 }
 0x1fe   : > { %567 = vmatmul.msk.f32.vlgmr.msra.gmra.mxu1 %vm400_vm5, %v384_v44 }
 0x26e   : > { %v365_v46 = vpop.permute.xlu1 %364 }
 0x26f   : > { %v367_v47 = vmul.f32 %v365_v46, %v329_v45 }
 0x27a   : > { %431 = sbr.rel (%p568_p1) target bundleno = 940 (0x3ac), region = 56 }
 0x27b   : > { %v421_v48 = vpop.f32.mrf.mxu1 }
 0x27c   : > { %v424_v49 = vadd.f32 %v421_v48, %v367_v47 }
 0x27e   : > { %426 = vst.msk [vmem:[#allocation10] sm:$0x3] %vm425_vm6, %v424_v49 }
 0x27f   : > { %v432_v50 = vld [vmem:[#allocation3] sm:$0x1]  ;;  %v788_v61 = vmov 0  }
 0x280   : > { %648 = vrcp.f32 %v432_v50  ;;  %v444_v53 = vand.u32 2147483648, %v432_v50  ;;  %vm438_vm7 = vweird.f32 %v432_v50  ;;  %v442_v55 = vand.u32 2147483647, %v432_v50 }
 0x282   : > { %v445_v57 = vor.u32 1.1754944e-38, %v444_v53  ;;  %vm443_vm10 = vcmp.eq.f32.partialorder %v442_v55, 8.507059e+37 }
 0x285   : > { %v447_v63 = vld [vmem:[#allocation10] sm:$0x3] }
 0x286   : > { %v649_v51 = vpop.eup %648 }
 0x287   : > { %v434_v52 = vmul.f32 %v649_v51, %v432_v50  ;;  %vm439_vm8 = vweird.f32 %v649_v51 }
 0x288   : > { %vm440_vm9 = vmor %vm438_vm7, %vm439_vm8 }
 0x289   : > { %v435_v54 = vsub.f32 1.0, %v434_v52 }
 0x28b   : > { %v436_v56 = vmul.f32 %v649_v51, %v435_v54 }
 0x28d   : > { %v437_v58 = vadd.f32 %v649_v51, %v436_v56 }
 0x28f   : > { %v441_v59 = vsel %vm440_vm9, %v649_v51, %v437_v58 }
 0x290   : > { %v446_v60 = vsel %vm443_vm10, %v445_v57, %v441_v59 }
 0x291   : > { %448 = vxpose.xlu0.b32.start.end [1/1] (short) (narrow) %v446_v60, 8 }
 0x2f8   : > { %647 = vset.pattern.permute.xlu0 %v788_v61 }
 0x335   : > { %v464_v62 = vpop.trf.xlu0 }
 0x336   : > { %482 = vperm.xlu0 %647, %v464_v62  }
 0x3a8   : > { %v483_v0 = vpop.permute.xlu0 %482 }
 0x3a9   : > { %v485_v1 = vmul.f32 %v483_v0, %v447_v63 }
 0x3ab   : > { %486 = vst.msk [vmem:[#allocation10] sm:$0x3] %vm425_vm6, %v485_v1 }
 0x3ac PF: > { %p594_p3 = scmp.eq.s32.totalorder %s845_s26, 1  ;;  %s789_s18 = smov [#allocation10]  }
 0x3ad   : > { %s493_s19 = sshll.u32 %s789_s18, 4  ;;  %s495_s24 = sshll.u32 %s946_s5, 4  ;;  %s494_s19 = int_to_ptr.vmem [resolvable:$true] %s493_s19  ;;  %s496_s24 = int_to_ptr.hbm [resolvable:$true] %s495_s24 }
 0x3ae   : > { %580 = dma.vmem_to_hbm [thread:$0]  (%p594_p3), %s494_s19, 32, %s496_s24, [#allocation7]  }
 0x3af   : > { %763 = dma.done.wait (%p594_p3), [#allocation7], 32  }
 0x3b0   : > { %765 = vsyncadd (%p594_p3), [#allocation7], 4294967264 }
 0x3b1 PF: > { %p18_p4 = scmp.ge.s32.totalorder %s860_s7, 4   ;;  %s950_s20 = smov %s772_s21 }
 0x3b2   : > { %s951_s21 = smov %s776_s22  ;;  %s952_s22 = smov %s870_s10 }
 0x3b3   : > { %s953_s23 = smov %s860_s7  ;;  %20 = sbr.rel (!%p18_p4) target bundleno = 7 (0x7), region = 89 }
 0x3b8   :  { %509 = vsyncpa [#allocation6], 1 }
 0x3b9   :  { %511 = vsyncpa [#allocation6 + $0x1], 1 }
 0x3ba   :  { %512 = vsyncpa [#allocation9], 1 }
 0x3bb   :  { %513 = vsyncpa [#allocation7], 1 }
 0x3bc   :  { %515 = vsyncpa [#allocation7 + $0x1], 1 }

</bundles_post_ra>
